<compile_context>
chip_gen: v6e
topology: v6e:2x2x1
jax: 0.10.0
libtpu: 0.0.40
codegen_flags: <defaults>
</compile_context>

<pallas_src>
import jax
import jax.numpy as jnp
from jax.experimental import pallas as pl
from jax.experimental.pallas import tpu as pltpu


def _clamp_kernel(x_ref, o_ref):
    x = x_ref[...]
    one = jnp.asarray(1, dtype=x.dtype)          # dtype-matched bounds, no promotion
    # torch.clamp(x, 1, 1): constant 1 everywhere, NaN propagates.
    o_ref[...] = jnp.clip(x, one, one)


def _sublane_multiple(dtype) -> int:
    # Packed sublane count: 8 for 4-byte, 16 for 2-byte, 32 for 1-byte dtypes.
    itemsize = jnp.dtype(dtype).itemsize
    return max(8, 32 // max(itemsize, 1))


def linear_der(x: jax.Array, *, lanes: int = 512,
               target_block_bytes: int = 2 * 1024 * 1024) -> jax.Array:
    """Pallas implementation of LinearDer.forward: clamp(x, 1, 1)."""
    orig_shape = x.shape
    dtype = x.dtype
    n = x.size
    if n == 0:
        return x

    flat = x.reshape(-1)

    # Pad only up to one lane row (<= lanes-1 elements).  This is the minimal
    # padding needed for the 2D reshape; no full-block padding, no large copy.
    pad = (-n) % lanes
    if pad:
        flat = jnp.pad(flat, (0, pad))
    rows = (n + pad) // lanes
    x2d = flat.reshape(rows, lanes)

    # Pick a block of roughly target_block_bytes (~2 MiB => 4x that with
    # double-buffered in+out, which fits default scoped VMEM on v5e/v6e/v7x).
    sub = _sublane_multiple(dtype)
    bytes_per_row = lanes * jnp.dtype(dtype).itemsize
    tile_rows_target = max(sub, target_block_bytes // bytes_per_row)

    if rows <= tile_rows_target:
        tile_rows = rows                       # full-extent block: always legal
    else:
        tile_rows = (tile_rows_target // sub) * sub
    grid = (pl.cdiv(rows, tile_rows),)         # last block may be partial (masked)

    out2d = pl.pallas_call(
        _clamp_kernel,
        out_shape=jax.ShapeDtypeStruct((rows, lanes), dtype),
        grid=grid,
        in_specs=[pl.BlockSpec((tile_rows, lanes), lambda i: (i, 0))],
        out_specs=pl.BlockSpec((tile_rows, lanes), lambda i: (i, 0)),
        compiler_params=pltpu.CompilerParams(
            dimension_semantics=("parallel",),
            vmem_limit_bytes=32 * 1024 * 1024,
        ),
    )(x2d)

    out_flat = out2d.reshape(-1)
    if pad:
        out_flat = out_flat[:n]
    return out_flat.reshape(orig_shape)


if __name__ == "__main__":
    key = jax.random.PRNGKey(0)
    # Small NCHW input consistent with an image-style tensor.
    x = jax.random.normal(key, (2, 4, 16, 16), dtype=jnp.float32)
    # Include a NaN to verify torch.clamp-style NaN propagation.
    x = x.at[0, 0, 0, 0].set(jnp.nan)

    y = jax.block_until_ready(linear_der(x))

    ref = jnp.clip(x, 1.0, 1.0)
    assert y.shape == x.shape and y.dtype == x.dtype
    assert jnp.allclose(y, ref, equal_nan=True), "mismatch vs reference clamp"

    print("KERNEL_OK")
</pallas_src>

<mosaic_0001>
module attributes {stable_mosaic.version = 11 : i64} {
  func.func @_clamp_kernel(%arg0: i32, %arg1: memref<4x512xf32, #tpu.memory_space<vmem>>, %arg2: memref<4x512xf32, #tpu.memory_space<vmem>>) attributes {dimension_semantics = [#tpu.dimension_semantics<parallel>], iteration_bounds = array<i64: 1>, scalar_prefetch = 0 : i64, scratch_operands = 0 : i64, tpu.core_type = #tpu.core_type<tc>, window_params = [{transform_indices = @transform_0, window_bounds = array<i64: 4, 512>}, {transform_indices = @transform_1, window_bounds = array<i64: 4, 512>}]} {
    %c0 = arith.constant 0 : index
    %c0_0 = arith.constant 0 : index
    %0 = vector.load %arg1[%c0, %c0_0] : memref<4x512xf32, #tpu.memory_space<vmem>>, vector<4x512xf32>
    %cst = arith.constant 1.000000e+00 : f32
    %cst_1 = arith.constant 1.000000e+00 : f32
    %1 = vector.broadcast %cst : f32 to vector<4x512xf32>
    %2 = arith.maximumf %1, %0 : vector<4x512xf32>
    %3 = vector.broadcast %cst_1 : f32 to vector<4x512xf32>
    %4 = arith.minimumf %3, %2 : vector<4x512xf32>
    %c0_2 = arith.constant 0 : index
    %c0_3 = arith.constant 0 : index
    %5 = vector.load %arg2[%c0_2, %c0_3] : memref<4x512xf32, #tpu.memory_space<vmem>>, vector<4x512xf32>
    tpu.vector_store %arg2[%c0_2, %c0_3], %4 {strides = array<i32>} : memref<4x512xf32, #tpu.memory_space<vmem>>, vector<4x512xf32>,
    return
  }
  func.func @transform_0(%arg0: i32) -> (i32, i32) {
    %c0_i32 = arith.constant 0 : i32
    %c0_i32_0 = arith.constant 0 : i32
    return %arg0, %c0_i32 : i32, i32
  }
  func.func @transform_1(%arg0: i32) -> (i32, i32) {
    %c0_i32 = arith.constant 0 : i32
    %c0_i32_0 = arith.constant 0 : i32
    return %arg0, %c0_i32 : i32, i32
  }
}

</mosaic_0001>

<bundles_post_ra>
// kernel: tpu_custom_call.1
= control target key start
LH: loop header
LB: loop body
LE: loop exit
PB: predicated region body
PF: predicated region fallthrough
CT: control target
= control target key end

     0   :  { %6 = vsyncpa [#allocation3], 0  ;;  %s108_s0 = inlined_call_operand.hbm [shape: f32[4,512], index: 0, kind: input, shape index: {}]   ;;  %s109_s1 = inlined_call_operand.hbm [shape: f32[4,512], index: 1, kind: output, shape index: {}]  }
   0x1   :  { %7 = vsyncpa [#allocation4], 0  ;;  %s90_s6 = smov [#allocation2]  }
   0x2   :  { %s14_s7 = sshll.u32 %s90_s6, 4  ;;  %s15_s7 = int_to_ptr.vmem [resolvable:$true] %s14_s7 }
   0x3   :  { %s54_s8 = scalar_lea.vmem %s15_s7, 256  ;;  %p59_p1 = scmp.lt.s32.totalorder %s15_s7, %s15_s7 }
   0x4   :  { %p55_p0 = scmp.ne.s32.totalorder %s15_s7, %s54_s8  ;;  %p60_p2 = scmp.lt.s32.totalorder %s54_s8, %s54_s8 }
   0x6   :  { %p61_p3 = por %p60_p2, %p59_p1 }
   0x8   :  { %p62_p4 = pnand %p61_p3, %p55_p0 }
   0xa   :  { %65 = shalt.err (!%p62_p4)
}
   0xb   :  { %17 = dma.hbm_to_vmem [thread:$0]  %s108_s0, 256, %s15_s7, [#allocation3]  }
   0xc   :  { %86 = dma.done.wait [#allocation3], 256  }
   0xd   :  { %87 = vsyncadd [#allocation3], 4294967040  ;;  %v21_v0 = vld [vmem:[#allocation2] sm:$0xff]  ;;  %v22_v1 = vld [vmem:[#allocation2 + $0x8] sm:$0xff]  ;;  %s91_s11 = smov [#allocation5]  }
   0xe   :  { %s35_s12 = sshll.u32 %s91_s11, 4  ;;  %v23_v2 = vmax.f32 %v21_v0, 1.0  ;;  %v24_v3 = vmax.f32 %v22_v1, 1.0  ;;  %s36_s12 = int_to_ptr.vmem [resolvable:$true] %s35_s12 }
   0xf   :  { %s66_s13 = scalar_lea.vmem %s36_s12, 256  ;;  %p71_p6 = scmp.lt.s32.totalorder %s36_s12, %s36_s12 }
  0x10   :  { %v25_v4 = vmin.f32 %v23_v2, 1.0  ;;  %v26_v5 = vmin.f32 %v24_v3, 1.0  ;;  %p67_p5 = scmp.ne.s32.totalorder %s36_s12, %s66_s13  ;;  %p72_p7 = scmp.lt.s32.totalorder %s66_s13, %s66_s13 }
  0x12   :  { %27 = vst [vmem:[#allocation5] sm:$0xff] %v25_v4  ;;  %28 = vst [vmem:[#allocation5 + $0x8] sm:$0xff] %v26_v5  ;;  %p73_p8 = por %p72_p7, %p71_p6 }
  0x14   :  { %p74_p9 = pnand %p73_p8, %p67_p5 }
  0x16   :  { %77 = shalt.err (!%p74_p9)
}
  0x17   :  { %38 = dma.vmem_to_hbm [thread:$0]  %s36_s12, 256, %s109_s1, [#allocation4]  }
  0x18   :  { %88 = dma.done.wait [#allocation4], 256  }
  0x19   :  { %89 = vsyncadd [#allocation4], 4294967040 }
  0x1a   :  { %42 = vsyncpa [#allocation3], 1 }
  0x1b   :  { %43 = vsyncpa [#allocation4], 1 }

</bundles_post_ra>
